<compile_context>
chip_gen: v7x
topology: tpu7x:2x2x1
jax: 0.10.0
libtpu: 0.0.40
codegen_flags: <defaults>
</compile_context>

<pallas_src>
import functools

import jax
import jax.numpy as jnp
from jax.experimental import pallas as pl
from jax.experimental.pallas import tpu as pltpu


_GELU_C0 = 0.7978845608028654            # sqrt(2/pi)
_GELU_C1 = 0.7978845608028654 * 0.044715


def _gelu_tanh(x):
    # TODO(synk): PyTorch nn.GELU() defaults to the exact erf form; the tanh
    # approximation (Horner form) is used here for guaranteed TPU (EUP) lowering.
    return 0.5 * x * (1.0 + jnp.tanh(x * (_GELU_C0 + _GELU_C1 * x * x)))


def _token_learner_kernel(x_ref, w1_ref, b1_ref, w2_ref, b2_ref, o_ref, attn_ref,
                          *, bb, hw):
    f_idx = pl.program_id(1)
    x = x_ref[...]                                                 # (C, bb*hw)

    # conv1 slice (this hidden tile, all groups, all bb samples) + GELU, f32 acc.
    h = jnp.dot(w1_ref[...], x, preferred_element_type=jnp.float32) + b1_ref[...]
    h = _gelu_tanh(h).astype(x.dtype)                              # (Ft*G, bb*hw)

    # Partial conv2 (block-diagonal columns of this hidden tile, 1/HW pre-folded).
    part = jnp.dot(w2_ref[...], h, preferred_element_type=jnp.float32)  # (G, bb*hw)

    @pl.when(f_idx == 0)
    def _():
        attn_ref[...] = part

    @pl.when(f_idx > 0)
    def _():
        attn_ref[...] = attn_ref[...] + part

    @pl.when(f_idx == pl.num_programs(1) - 1)
    def _():
        attn = (attn_ref[...] + b2_ref[...]).astype(x.dtype)       # (G, bb*hw)
        for j in range(bb):                                        # bb <= 8: bounded unroll
            sl = slice(j * hw, (j + 1) * hw)
            o_ref[j] = jax.lax.dot_general(
                attn[:, sl], x[:, sl],
                dimension_numbers=(((1,), (1,)), ((), ())),
                preferred_element_type=jnp.float32,
            ).astype(o_ref.dtype)                                  # (G, C)


def _choose_ft(F, G, C, bb_hw, itemsize, budget):
    # Legal hidden-tile sizes (per group): divisors of F whose row blocks (ft*G)
    # satisfy the (8, 128) layout rule when they are not the full hidden extent.
    legal = [ft for ft in range(F, 0, -1)
             if F % ft == 0 and (ft == F or (ft * G) % 128 == 0)]
    for ft in legal:                                   # largest first
        fp = (2 * ft * G * C * itemsize                # w1 block (double-buffered)
              + ft * G * bb_hw * (4 + itemsize))       # hidden activation (f32 + cast)
        if fp <= budget:
            return ft
    return legal[-1]


def token_learner(x, w1, b1, w2, b2):
    """TokenLearner forward.

    x  : (B, C, H, W)
    w1 : (G*F, C)   first grouped 1x1 conv weight (group g = row // F)
    b1 : (G*F,)
    w2 : (G, F)     second grouped 1x1 conv weight
    b2 : (G,)
    returns (B, C, G)
    """
    B, C, H, W = x.shape
    G, F = w2.shape
    GF = G * F
    assert w1.shape == (GF, C) and b1.shape == (GF,) and b2.shape == (G,)
    HW = H * W
    inv_hw = 1.0 / HW
    isz = x.dtype.itemsize

    # Lane-dense spatial axis, zero-padded to a multiple of 128 (padded pixels have
    # x == 0 so they contribute nothing to the weighted spatial mean).
    HW_pad = ((HW + 127) // 128) * 128
    x3 = x.reshape(B, C, HW)
    if HW_pad != HW:
        x3 = jnp.pad(x3, ((0, 0), (0, 0), (0, HW_pad - HW)))

    # Samples per grid step: bounded (<=8) unroll for the pooling loop, keep
    # >= min(B, 8) grid steps for pipelining / megacore, and cap the x block size.
    bb = max(1, min(8, B, pl.cdiv(B, min(B, 8))))
    bb = max(1, min(bb, (4 * 1024 * 1024) // max(1, C * HW_pad * isz)))
    steps_b = pl.cdiv(B, bb)
    B_pad = steps_b * bb
    if B_pad != B:
        x3 = jnp.pad(x3, ((0, B_pad - B), (0, 0), (0, 0)))

    # (C, B_pad*HW_pad): layout plumbing so each grid step sees one lane-dense slab.
    x2 = x3.transpose(1, 0, 2).reshape(C, B_pad * HW_pad)

    # Hidden rows permuted to (f, g) order so the hidden axis tiles contiguously.
    w1p = w1.reshape(G, F, C).transpose(1, 0, 2).reshape(F * G, C)
    b1p = b1.astype(jnp.float32).reshape(G, F).T.reshape(F * G, 1)
    # Block-diagonal conv2 weight in the permuted column order, 1/HW folded in.
    w2bd = (w2.astype(jnp.float32).T[:, None, :]             # (F, 1, G)
            * jnp.eye(G, dtype=jnp.float32)[None, :, :])     # (F, G, G): [f, g', g]
    w2bd = (w2bd.transpose(2, 0, 1).reshape(G, F * G) * inv_hw).astype(w2.dtype)
    b2c = (b2.astype(jnp.float32) * inv_hw).reshape(G, 1)

    # Hidden-dimension tile (per group): largest layout-legal divisor of F keeping
    # the per-step working set within a few MiB (fits scoped VMEM on v5e/v6e/v7x).
    ft = _choose_ft(F, G, C, bb * HW_pad, isz, budget=8 * 1024 * 1024)
    steps_f = F // ft
    ftg = ft * G

    out = pl.pallas_call(
        functools.partial(_token_learner_kernel, bb=bb, hw=HW_pad),
        out_shape=jax.ShapeDtypeStruct((B_pad, G, C), x.dtype),
        grid=(steps_b, steps_f),
        in_specs=[
            pl.BlockSpec((C, bb * HW_pad), lambda b, f: (0, b)),   # x (invariant in f)
            pl.BlockSpec((ftg, C), lambda b, f: (f, 0)),           # w1 hidden tile
            pl.BlockSpec((ftg, 1), lambda b, f: (f, 0)),           # b1 hidden tile
            pl.BlockSpec((G, ftg), lambda b, f: (0, f)),           # w2 block-diag cols
            pl.BlockSpec((G, 1), lambda b, f: (0, 0)),             # b2
        ],
        out_specs=pl.BlockSpec((bb, G, C), lambda b, f: (b, 0, 0)),
        scratch_shapes=[pltpu.VMEM((G, bb * HW_pad), jnp.float32)],  # attn accumulator
        compiler_params=pltpu.CompilerParams(
            dimension_semantics=("parallel", "arbitrary"),
            vmem_limit_bytes=32 * 1024 * 1024,
        ),
    )(x2, w1p, b1p, w2bd, b2c)

    # (B, C, G): the PyTorch module's output layout.
    return jnp.swapaxes(out[:B], 1, 2)


def token_learner_ref(x, w1, b1, w2, b2):
    """Pure-JAX reference (same math & same GELU approximation)."""
    B, C, H, W = x.shape
    G, F = w2.shape
    xf = x.reshape(B, C, H * W).astype(jnp.float32)
    h = jnp.einsum("fc,bcp->bfp", w1.astype(jnp.float32), xf) \
        + b1.astype(jnp.float32)[None, :, None]
    h = _gelu_tanh(h)
    hr = h.reshape(B, G, F, H * W)
    a = jnp.einsum("gf,bgfp->bgp", w2.astype(jnp.float32), hr) \
        + b2.astype(jnp.float32)[None, :, None]
    out = jnp.einsum("bcp,bgp->bcg", xf, a) / (H * W)
    return out.astype(x.dtype)


if __name__ == "__main__":
    key = jax.random.PRNGKey(0)
    B, C, H, W = 2, 4, 16, 16          # dim = 4
    G, ff_mult = 8, 2                   # num_output_tokens = 8
    F = C * ff_mult

    k1, k2, k3, k4, k5 = jax.random.split(key, 5)
    x = jax.random.normal(k1, (B, C, H, W), dtype=jnp.float32)
    w1 = jax.random.normal(k2, (G * F, C), dtype=jnp.float32) * (1.0 / (C ** 0.5))
    b1 = jax.random.normal(k3, (G * F,), dtype=jnp.float32) * 0.1
    w2 = jax.random.normal(k4, (G, F), dtype=jnp.float32) * (1.0 / (F ** 0.5))
    b2 = jax.random.normal(k5, (G,), dtype=jnp.float32) * 0.1

    y = jax.block_until_ready(token_learner(x, w1, b1, w2, b2))

    y_ref = token_learner_ref(x, w1, b1, w2, b2)
    assert y.shape == (B, C, G), y.shape
    max_err = float(jnp.max(jnp.abs(y.astype(jnp.float32) - y_ref.astype(jnp.float32))))
    assert jnp.allclose(y, y_ref, rtol=1e-4, atol=1e-5), f"max abs err = {max_err}"

    print("KERNEL_OK")
</pallas_src>

<mosaic_0001>
module attributes {stable_mosaic.version = 11 : i64} {
  func.func @_token_learner_kernel(%arg0: i32, %arg1: i32, %arg2: memref<4x256xf32, #tpu.memory_space<vmem>>, %arg3: memref<64x4xf32, #tpu.memory_space<vmem>>, %arg4: memref<64x1xf32, #tpu.memory_space<vmem>>, %arg5: memref<8x64xf32, #tpu.memory_space<vmem>>, %arg6: memref<8x1xf32, #tpu.memory_space<vmem>>, %arg7: memref<1x8x4xf32, #tpu.memory_space<vmem>>, %arg8: memref<8x256xf32, #tpu.memory_space<vmem>>) attributes {dimension_semantics = [#tpu.dimension_semantics<parallel>, #tpu.dimension_semantics<arbitrary>], iteration_bounds = array<i64: 2, 1>, scalar_prefetch = 0 : i64, scratch_operands = 1 : i64, tpu.core_type = #tpu.core_type<tc>, window_params = [{transform_indices = @transform_0, window_bounds = array<i64: 4, 256>}, {transform_indices = @transform_1, window_bounds = array<i64: 64, 4>}, {transform_indices = @transform_2, window_bounds = array<i64: 64, 1>}, {transform_indices = @transform_3, window_bounds = array<i64: 8, 64>}, {pipeline_mode = #tpu.pipeline_mode<synchronous>, transform_indices = @transform_4, window_bounds = array<i64: 8, 1>}, {transform_indices = @transform_5, window_bounds = array<i64: 1, 8, 4>}]} {
    %c0 = arith.constant 0 : index
    %c0_0 = arith.constant 0 : index
    %0 = vector.load %arg2[%c0, %c0_0] : memref<4x256xf32, #tpu.memory_space<vmem>>, vector<4x256xf32>
    %c0_1 = arith.constant 0 : index
    %c0_2 = arith.constant 0 : index
    %1 = vector.load %arg3[%c0_1, %c0_2] : memref<64x4xf32, #tpu.memory_space<vmem>>, vector<64x4xf32>
    %cst = arith.constant dense<0.000000e+00> : vector<64x256xf32>
    %2 = tpu.matmul %1, %0, %cst {dimension_numbers = #tpu.dot_dimension_numbers<[1], [0], [0], [1], [0, 0, 1, 1], [], []>} : vector<64x4xf32>, vector<4x256xf32>, vector<64x256xf32> -> vector<64x256xf32>
    %c0_3 = arith.constant 0 : index
    %c0_4 = arith.constant 0 : index
    %3 = vector.load %arg4[%c0_3, %c0_4] : memref<64x1xf32, #tpu.memory_space<vmem>>, vector<64x1xf32>
    %4 = vector.broadcast %3 : vector<64x1xf32> to vector<64x256xf32>
    %5 = arith.addf %2, %4 : vector<64x256xf32>
    %cst_5 = arith.constant 5.000000e-01 : f32
    %6 = vector.broadcast %cst_5 : f32 to vector<64x256xf32>
    %7 = arith.mulf %6, %5 : vector<64x256xf32>
    %cst_6 = arith.constant 0.0356774069 : f32
    %8 = vector.broadcast %cst_6 : f32 to vector<64x256xf32>
    %9 = arith.mulf %8, %5 : vector<64x256xf32>
    %10 = arith.mulf %9, %5 : vector<64x256xf32>
    %cst_7 = arith.constant 0.797884583 : f32
    %11 = vector.broadcast %cst_7 : f32 to vector<64x256xf32>
    %12 = arith.addf %11, %10 : vector<64x256xf32>
    %13 = arith.mulf %5, %12 : vector<64x256xf32>
    %14 = math.tanh %13 : vector<64x256xf32>
    %cst_8 = arith.constant 1.000000e+00 : f32
    %15 = vector.broadcast %cst_8 : f32 to vector<64x256xf32>
    %16 = arith.addf %15, %14 : vector<64x256xf32>
    %17 = arith.mulf %7, %16 : vector<64x256xf32>
    %c0_9 = arith.constant 0 : index
    %c0_10 = arith.constant 0 : index
    %18 = vector.load %arg5[%c0_9, %c0_10] : memref<8x64xf32, #tpu.memory_space<vmem>>, vector<8x64xf32>
    %cst_11 = arith.constant dense<0.000000e+00> : vector<8x256xf32>
    %19 = tpu.matmul %18, %17, %cst_11 {dimension_numbers = #tpu.dot_dimension_numbers<[1], [0], [0], [1], [0, 0, 1, 1], [], []>} : vector<8x64xf32>, vector<64x256xf32>, vector<8x256xf32> -> vector<8x256xf32>
    %c0_i32 = arith.constant 0 : i32
    %20 = arith.cmpi eq, %arg1, %c0_i32 : i32
    %21 = arith.extui %20 : i1 to i32
    %c0_i32_12 = arith.constant 0 : i32
    %22 = arith.cmpi ne, %21, %c0_i32_12 : i32
    scf.if %22 {
      %c0_17 = arith.constant 0 : index
      %c0_18 = arith.constant 0 : index
      %29 = vector.load %arg8[%c0_17, %c0_18] : memref<8x256xf32, #tpu.memory_space<vmem>>, vector<8x256xf32>
      tpu.vector_store %arg8[%c0_17, %c0_18], %19 {strides = array<i32>} : memref<8x256xf32, #tpu.memory_space<vmem>>, vector<8x256xf32>,
    } else {
    }
    %c0_i32_13 = arith.constant 0 : i32
    %23 = arith.cmpi sgt, %arg1, %c0_i32_13 : i32
    %24 = arith.extui %23 : i1 to i32
    %c0_i32_14 = arith.constant 0 : i32
    %25 = arith.cmpi ne, %24, %c0_i32_14 : i32
    scf.if %25 {
      %c0_17 = arith.constant 0 : index
      %c0_18 = arith.constant 0 : index
      %29 = vector.load %arg8[%c0_17, %c0_18] : memref<8x256xf32, #tpu.memory_space<vmem>>, vector<8x256xf32>
      %30 = arith.addf %29, %19 : vector<8x256xf32>
      %c0_19 = arith.constant 0 : index
      %c0_20 = arith.constant 0 : index
      %31 = vector.load %arg8[%c0_19, %c0_20] : memref<8x256xf32, #tpu.memory_space<vmem>>, vector<8x256xf32>
      tpu.vector_store %arg8[%c0_19, %c0_20], %30 {strides = array<i32>} : memref<8x256xf32, #tpu.memory_space<vmem>>, vector<8x256xf32>,
    } else {
    }
    %c0_i32_15 = arith.constant 0 : i32
    %26 = arith.cmpi eq, %arg1, %c0_i32_15 : i32
    %27 = arith.extui %26 : i1 to i32
    %c0_i32_16 = arith.constant 0 : i32
    %28 = arith.cmpi ne, %27, %c0_i32_16 : i32
    scf.if %28 {
      %c0_17 = arith.constant 0 : index
      %c0_18 = arith.constant 0 : index
      %29 = vector.load %arg8[%c0_17, %c0_18] : memref<8x256xf32, #tpu.memory_space<vmem>>, vector<8x256xf32>
      %c0_19 = arith.constant 0 : index
      %c0_20 = arith.constant 0 : index
      %30 = vector.load %arg6[%c0_19, %c0_20] : memref<8x1xf32, #tpu.memory_space<vmem>>, vector<8x1xf32>
      %31 = vector.broadcast %30 : vector<8x1xf32> to vector<8x256xf32>
      %32 = arith.addf %29, %31 : vector<8x256xf32>
      %cst_21 = arith.constant dense<0.000000e+00> : vector<8x4xf32>
      %33 = tpu.matmul %32, %0, %cst_21 {dimension_numbers = #tpu.dot_dimension_numbers<[1], [1], [0], [0], [0, 0, 1, 0], [], []>} : vector<8x256xf32>, vector<4x256xf32>, vector<8x4xf32> -> vector<8x4xf32>
      %c0_22 = arith.constant 0 : index
      %c0_23 = arith.constant 0 : index
      %c0_24 = arith.constant 0 : index
      %34 = vector.load %arg7[%c0_22, %c0_23, %c0_24] : memref<1x8x4xf32, #tpu.memory_space<vmem>>, vector<1x8x4xf32>
      %35 = vector.shape_cast %34 : vector<1x8x4xf32> to vector<8x4xf32>
      %36 = vector.shape_cast %33 : vector<8x4xf32> to vector<1x8x4xf32>
      tpu.vector_store %arg7[%c0_22, %c0_23, %c0_24], %36 {strides = array<i32>} : memref<1x8x4xf32, #tpu.memory_space<vmem>>, vector<1x8x4xf32>,
    } else {
    }
    return
  }
  func.func @transform_0(%arg0: i32, %arg1: i32) -> (i32, i32) {
    %c0_i32 = arith.constant 0 : i32
    %c0_i32_0 = arith.constant 0 : i32
    return %c0_i32, %arg0 : i32, i32
  }
  func.func @transform_1(%arg0: i32, %arg1: i32) -> (i32, i32) {
    %c0_i32 = arith.constant 0 : i32
    %c0_i32_0 = arith.constant 0 : i32
    return %arg1, %c0_i32 : i32, i32
  }
  func.func @transform_2(%arg0: i32, %arg1: i32) -> (i32, i32) {
    %c0_i32 = arith.constant 0 : i32
    %c0_i32_0 = arith.constant 0 : i32
    return %arg1, %c0_i32 : i32, i32
  }
  func.func @transform_3(%arg0: i32, %arg1: i32) -> (i32, i32) {
    %c0_i32 = arith.constant 0 : i32
    %c0_i32_0 = arith.constant 0 : i32
    return %c0_i32, %arg1 : i32, i32
  }
  func.func @transform_4(%arg0: i32, %arg1: i32) -> (i32, i32) {
    %c0_i32 = arith.constant 0 : i32
    %c0_i32_0 = arith.constant 0 : i32
    %c0_i32_1 = arith.constant 0 : i32
    return %c0_i32, %c0_i32_0 : i32, i32
  }
  func.func @transform_5(%arg0: i32, %arg1: i32) -> (i32, i32, i32) {
    %c0_i32 = arith.constant 0 : i32
    %c0_i32_0 = arith.constant 0 : i32
    %c0_i32_1 = arith.constant 0 : i32
    return %arg0, %c0_i32, %c0_i32_0 : i32, i32, i32
  }
}

</mosaic_0001>

<bundles_post_ra>
// kernel: tpu_custom_call.1
= control target key start
LH: loop header
LB: loop body
LE: loop exit
PB: predicated region body
PF: predicated region fallthrough
CT: control target
= control target key end

     0   :  { %s1069_s18 = smov 0   ;;  %s1071_s19 = smov 0   ;;  %s1249_s0 = inlined_call_operand.vmem [shape: f32[4,512], index: 0, kind: input, shape index: {}]   ;;  %s1250_s1 = inlined_call_operand.vmem [shape: f32[64,4], index: 1, kind: input, shape index: {}]   ;;  %s1251_s2 = inlined_call_operand.vmem [shape: f32[64,1], index: 2, kind: input, shape index: {}]   ;;  %s1252_s3 = inlined_call_operand.vmem [shape: f32[8,64], index: 3, kind: input, shape index: {}]   ;;  %s1253_s4 = inlined_call_operand.vmem [shape: f32[8,1], index: 4, kind: input, shape index: {}]   ;;  %s1254_s5 = inlined_call_operand.vmem [shape: f32[2,8,4], index: 5, kind: output, shape index: {}]  }
   0x1   :  { %s1073_s20 = smov 0  }
   0x2 LB: > { %s27_s21 = sadd.s32 1, %s1031_s19  ;;  %p919_p0 = scmp.ge.s32.totalorder %s1035_s20, 1  ;;  %s1035_s20 = sphi %s1073_s20, %s15_s20   ;;  %s1031_s19 = sphi %s1071_s19, %s1256_s19   ;;  %s1027_s18 = sphi %s1069_s18, %s1255_s18  }
   0x3   : > { %p29_p1 = scmp.ge.s32.totalorder %s27_s21, 2  ;;  %p231_p2 = scmp.lt.s32.totalorder %s1035_s20, 3 }
   0x5   : > { %s1258_s21 = smov (%p29_p1, %s27_s21), 0  ;;  %p232_p3 = pnand %p919_p0, %p231_p2 }
   0x6   : > { %s920_s22 = sshll.u32 (!%p232_p3), %s1027_s18, 1  ;;  %v1037_v0 = vmov (!%p232_p3), 0.0   ;;  %v1038_v1 = vmov (!%p232_p3), 0   ;;  %v307_v2 = vld [vmem:[%s1251_s2] sm:$0xff] (!%p232_p3)  ;;  %v309_v3 = vld [vmem:[%s1251_s2 + $0x10] sm:$0xff] (!%p232_p3)  ;;  %v308_v4 = vld [vmem:[%s1251_s2 + $0x8] sm:$0xff] (!%p232_p3) }
   0x7   : > { %235 = sbr.rel (%p232_p3) target bundleno = 723 (0x2d3), region = 40  ;;  %p273_p4 = scmp.lt.s32.totalorder (!%p232_p3), %s920_s22, 3  ;;  %451 = vmatprep.mubr.f32.mxu0 (!%p232_p3), %v1037_v0  ;;  %697 = vmatprep.mubr.f32.mxu1 (!%p232_p3), %v1037_v0  ;;  %v310_v5 = vld [vmem:[%s1251_s2 + $0x18] sm:$0xff] (!%p232_p3)  ;;  %vm382_vm0 = vcmask (!%p232_p3), 1043456   ;;  %v299_v8 = vld [vmem:[%s1250_s1] sm:$0xff] (!%p232_p3)  ;;  %vm357_vm1 = vcmask (!%p232_p3), 31744  }
   0x8   : > { %978 = vset.pattern.permute.xlu0 (!%p232_p3), %v1038_v1  ;;  %979 = vset.pattern.permute.xlu1 (!%p232_p3), %v1038_v1  ;;  %v311_v9 = vld [vmem:[%s1251_s2 + $0x20] sm:$0xff] (!%p232_p3)  ;;  %v312_v10 = vld [vmem:[%s1251_s2 + $0x28] sm:$0xff] (!%p232_p3)  ;;  %v313_v12 = vld [vmem:[%s1251_s2 + $0x30] sm:$0xff] (!%p232_p3)  ;;  %vm629_vm2 = vcmask (!%p232_p3), 523264   ;;  %p294_p5 = scmp.lt.s32.totalorder (!%p232_p3), %s1027_s18, 1 }
   0x9   : > { %317 = vperm.xlu0 (!%p232_p3), %978, %v307_v2   ;;  %327 = vperm.xlu1 (!%p232_p3), %979, %v309_v3   ;;  %v300_v11 = vld [vmem:[%s1250_s1 + $0x8] sm:$0xff] (!%p232_p3)  ;;  %v314_v13 = vld [vmem:[%s1251_s2 + $0x38] sm:$0xff] (!%p232_p3)  ;;  %v301_v14 = vld [vmem:[%s1250_s1 + $0x10] sm:$0xff] (!%p232_p3) }
   0xa   : > { %v725_v15 = vld [vmem:[%s1253_s4] sm:$0xff] (!%p232_p3)  ;;  %v302_v16 = vld [vmem:[%s1250_s1 + $0x18] sm:$0xff] (!%p232_p3)  ;;  %v304_v18 = vld [vmem:[%s1250_s1 + $0x28] sm:$0xff] (!%p232_p3) }
   0xb   : > { %v303_v17 = vld [vmem:[%s1250_s1 + $0x20] sm:$0xff] (!%p232_p3)  ;;  %v305_v19 = vld [vmem:[%s1250_s1 + $0x30] sm:$0xff] (!%p232_p3)  ;;  %v306_v20 = vld [vmem:[%s1250_s1 + $0x38] sm:$0xff] (!%p232_p3) }
   0xd   : > { %322 = vperm.xlu0 (!%p232_p3), %978, %v308_v4   ;;  %332 = vperm.xlu1 (!%p232_p3), %979, %v310_v5  }
   0xe   : > { %s1260_s22 = smov (!%p273_p4, %s920_s22), 3  ;;  %s1262_s18 = smov (!%p294_p5, %s1027_s18), 1 }
   0xf   : > { %s921_s27 = sshll.u32 %s1260_s22, 2  ;;  %s922_s17 = sshll.u32 %s1262_s18, 3 }
  0x10   : > { %s276_s9 = scalar_lea.vmem %s1249_s0, %s921_s27  ;;  %s297_s24 = scalar_lea.vmem %s1254_s5, %s922_s17 }
  0x11   : > { %v1105_v6 = vld [vmem:[%s276_s9] sm:$0xff]  ;;  %337 = vperm.xlu0 %978, %v311_v9   ;;  %342 = vperm.xlu1 %979, %v312_v10  }
  0x12   : > { %v1109_v7 = vcombine.high %v1105_v6, %v1105_v6 }
  0x14   : > { %923 = vmatprep.subr.msk.mxu0 %vm382_vm0, %v1109_v7 }
  0x15   : > { %924 = vmatpush1.msk.msra.mxu0 %vm382_vm0, %v1105_v6  ;;  %347 = vperm.xlu0 %978, %v313_v12  }
  0x16   : > { %925 = vmatmul.mubr.msk.f32.vlgmr.msra.gmra.mrb[0].mxu0 %vm357_vm1, %v299_v8  ;;  %352 = vperm.xlu1 %979, %v314_v13  }
  0x17   : > { %457 = vmatprep.mubr.f32.mxu0 %v1037_v0 }
  0x19   : > { %728 = vperm.xlu0 %978, %v725_v15  }
  0x1a   : > { %926 = vmatmul.mubr.msk.f32.gmra.mrb[2].mxu0 %vm357_vm1, %v300_v11 }
  0x1b   : > { %463 = vmatprep.mubr.f32.mxu0 %v1037_v0 }
  0x1e   : > { %927 = vmatmul.mubr.msk.f32.gmra.mrb[4].mxu0 %vm357_vm1, %v301_v14 }
  0x1f   : > { %469 = vmatprep.mubr.f32.mxu0 %v1037_v0 }
  0x22   : > { %928 = vmatmul.mubr.msk.f32.gmra.mrb[6].mxu0 %vm357_vm1, %v302_v16 }
  0x23   : > { %475 = vmatprep.mubr.f32.mxu0 %v1037_v0 }
  0x26   : > { %929 = vmatmul.mubr.msk.f32.gmra.mrb[8].mxu0 %vm357_vm1, %v303_v17 }
  0x27   : > { %481 = vmatprep.mubr.f32.mxu0 %v1037_v0 }
  0x2a   : > { %930 = vmatmul.mubr.msk.f32.gmra.mrb[10].mxu0 %vm357_vm1, %v304_v18 }
  0x2b   : > { %487 = vmatprep.mubr.f32.mxu0 %v1037_v0 }
  0x2e   : > { %931 = vmatmul.mubr.msk.f32.gmra.mrb[12].mxu0 %vm357_vm1, %v305_v19 }
  0x2f   : > { %493 = vmatprep.mubr.f32.mxu0 %v1037_v0 }
  0x32   : > { %932 = vmatmul.mubr.msk.f32.gmra.mrb[14].mxu0 %vm357_vm1, %v306_v20 }
  0x88   : > { %v318_v21 = vpop.permute.xlu0 %317  ;;  %v328_v34 = vpop.permute.xlu1 %327 }
  0x8c   : > { %v323_v27 = vpop.permute.xlu0 %322  ;;  %v333_v51 = vpop.permute.xlu1 %332 }
  0x90   : > { %v338_v63 = vpop.permute.xlu0 %337  ;;  %v343_v17 = vpop.permute.xlu1 %342 }
  0xe9   : > { %v453_v22 = vpop.f32.mrb[0].mxu0 }
  0xea   : > { %v454_v23 = vadd.f32 %v453_v22, %v318_v21  ;;  %v455_v24 = vpop.f32.mrb[1].mxu0 }
  0xeb   : > { %v456_v25 = vadd.f32 %v455_v24, %v318_v21 }
  0xec   : > { %v516_v26 = vmul.f32 0.035677407, %v454_v23  ;;  %v500_v9 = vmul.f32 0.5, %v454_v23 }
  0xed   : > { %v517_v28 = vmul.f32 0.035677407, %v456_v25  ;;  %v459_v29 = vpop.f32.mrb[2].mxu0  ;;  %v501_v13 = vmul.f32 0.5, %v456_v25 }
  0xee   : > { %v532_v30 = vmul.f32 %v516_v26, %v454_v23  ;;  %v460_v31 = vadd.f32 %v459_v29, %v323_v27  ;;  %v461_v32 = vpop.f32.mrb[3].mxu0 }
  0xef   : > { %v533_v33 = vmul.f32 %v517_v28, %v456_v25  ;;  %v462_v35 = vadd.f32 %v461_v32, %v323_v27 }
  0xf0   : > { %v548_v36 = vadd.f32 0.7978846, %v532_v30  ;;  %v518_v37 = vmul.f32 0.035677407, %v460_v31  ;;  %v502_v16 = vmul.f32 0.5, %v460_v31 }
  0xf1   : > { %v549_v38 = vadd.f32 0.7978846, %v533_v33  ;;  %v519_v39 = vmul.f32 0.035677407, %v462_v35  ;;  %v465_v40 = vpop.f32.mrb[4].mxu0  ;;  %v503_v21 = vmul.f32 0.5, %v462_v35 }
  0xf2   : > { %v564_v41 = vmul.f32 %v548_v36, %v454_v23  ;;  %v534_v42 = vmul.f32 %v518_v37, %v460_v31  ;;  %v466_v43 = vadd.f32 %v465_v40, %v328_v34  ;;  %v467_v44 = vpop.f32.mrb[5].mxu0  ;;  %v348_v36 = vpop.permute.xlu0 %347 }
  0xf3   : > { %v535_v45 = vmul.f32 %v519_v39, %v462_v35  ;;  %v1160_v46 = vadd.f32 %v467_v44, %v328_v34  ;;  %v565_v47 = vmul.f32 %v549_v38, %v456_v25 }
  0xf4   : > { %v550_v48 = vadd.f32 0.7978846, %v534_v42  ;;  %v520_v49 = vmul.f32 0.035677407, %v466_v43  ;;  %981 = vtanh.f32 %v564_v41  ;;  %v1183_v27 = vmul.f32 0.5, %v466_v43 }
  0xf5   : > { %v551_v50 = vadd.f32 0.7978846, %v535_v45  ;;  %v521_v52 = vmul.f32 0.035677407, %v1160_v46  ;;  %v471_v53 = vpop.f32.mrb[6].mxu0  ;;  %983 = vtanh.f32 %v565_v47 }
  0xf6   : > { %v566_v54 = vmul.f32 %v550_v48, %v460_v31  ;;  %v536_v55 = vmul.f32 %v520_v49, %v466_v43  ;;  %v1163_v56 = vadd.f32 %v471_v53, %v333_v51  ;;  %v473_v57 = vpop.f32.mrb[7].mxu0 }
  0xf7   : > { %v537_v58 = vmul.f32 %v521_v52, %v1160_v46  ;;  %v1166_v59 = vadd.f32 %v473_v57, %v333_v51  ;;  %v567_v60 = vmul.f32 %v551_v50, %v462_v35  ;;  %v353_v57 = vpop.permute.xlu1 %352 }
  0xf8   : > { %v552_v61 = vadd.f32 0.7978846, %v536_v55  ;;  %v522_v62 = vmul.f32 0.035677407, %v1163_v56  ;;  %985 = vtanh.f32 %v566_v54 }
  0xf9   : > { %v553_v0 = vadd.f32 0.7978846, %v537_v58  ;;  %v523_v1 = vmul.f32 0.035677407, %v1166_v59  ;;  %v477_v2 = vpop.f32.mrb[8].mxu0  ;;  %987 = vtanh.f32 %v567_v60 }
  0xfa   : > { %v568_v3 = vmul.f32 %v552_v61, %v466_v43  ;;  %v538_v4 = vmul.f32 %v522_v62, %v1163_v56  ;;  %v1171_v5 = vadd.f32 %v477_v2, %v338_v63  ;;  %v479_v8 = vpop.f32.mrb[9].mxu0 }
  0xfb   : > { %v569_v10 = vmul.f32 %v553_v0, %v1160_v46  ;;  %v539_v11 = vmul.f32 %v523_v1, %v1166_v59  ;;  %v1175_v12 = vadd.f32 %v479_v8, %v338_v63 }
  0xfc   : > { %989 = vtanh.f32 %v568_v3  ;;  %v554_v14 = vadd.f32 0.7978846, %v538_v4  ;;  %v524_v15 = vmul.f32 0.035677407, %v1171_v5 }
  0xfd   : > { %991 = vtanh.f32 %v569_v10  ;;  %v555_v18 = vadd.f32 0.7978846, %v539_v11  ;;  %v525_v19 = vmul.f32 0.035677407, %v1175_v12  ;;  %v483_v20 = vpop.f32.mrb[10].mxu0 }
  0xfe   : > { %v982_v22 = vpop.eup %981  ;;  %v570_v23 = vmul.f32 %v554_v14, %v1163_v56  ;;  %v540_v24 = vmul.f32 %v524_v15, %v1171_v5  ;;  %v1181_v26 = vadd.f32 %v483_v20, %v343_v17  ;;  %v485_v25 = vpop.f32.mrb[11].mxu0 }
  0xff   : > { %v984_v28 = vpop.eup %983  ;;  %v571_v29 = vmul.f32 %v555_v18, %v1166_v59  ;;  %v541_v30 = vmul.f32 %v525_v19, %v1175_v12  ;;  %v1187_v31 = vadd.f32 %v485_v25, %v343_v17  ;;  %v596_v32 = vadd.f32 1.0, %v982_v22 }
 0x100   : > { %993 = vtanh.f32 %v570_v23  ;;  %v556_v33 = vadd.f32 0.7978846, %v540_v24  ;;  %v526_v34 = vmul.f32 0.035677407, %v1181_v26  ;;  %v597_v35 = vadd.f32 1.0, %v984_v28 }
 0x101   : > { %995 = vtanh.f32 %v571_v29  ;;  %v557_v37 = vadd.f32 0.7978846, %v541_v30  ;;  %v527_v38 = vmul.f32 0.035677407, %v1187_v31  ;;  %v489_v39 = vpop.f32.mrb[12].mxu0  ;;  %v612_v40 = vmul.f32 %v596_v32, %v500_v9 }
 0x102   : > { %v986_v41 = vpop.eup %985  ;;  %v572_v42 = vmul.f32 %v556_v33, %v1171_v5  ;;  %v542_v43 = vmul.f32 %v526_v34, %v1181_v26  ;;  %v1193_v44 = vadd.f32 %v489_v39, %v348_v36  ;;  %v491_v45 = vpop.f32.mrb[13].mxu0  ;;  %v613_v47 = vmul.f32 %v597_v35, %v501_v13 }
 0x103   : > { %v988_v48 = vpop.eup %987  ;;  %v573_v49 = vmul.f32 %v557_v37, %v1175_v12  ;;  %v543_v50 = vmul.f32 %v527_v38, %v1187_v31  ;;  %v1197_v51 = vadd.f32 %v491_v45, %v348_v36  ;;  %v598_v52 = vadd.f32 1.0, %v986_v41 }
 0x104   : > { %997 = vtanh.f32 %v572_v42  ;;  %v558_v53 = vadd.f32 0.7978846, %v542_v43  ;;  %v528_v54 = vmul.f32 0.035677407, %v1193_v44  ;;  %v599_v55 = vadd.f32 1.0, %v988_v48 }
 0x105   : > { %999 = vtanh.f32 %v573_v49  ;;  %v559_v58 = vadd.f32 0.7978846, %v543_v50  ;;  %v529_v60 = vmul.f32 0.035677407, %v1197_v51  ;;  %v495_v61 = vpop.f32.mrb[14].mxu0  ;;  %v614_v62 = vmul.f32 %v598_v52, %v502_v16 }
 0x106   : > { %v990_v63 = vpop.eup %989  ;;  %v574_v0 = vmul.f32 %v558_v53, %v1181_v26  ;;  %v544_v1 = vmul.f32 %v528_v54, %v1193_v44  ;;  %v1203_v2 = vadd.f32 %v495_v61, %v353_v57  ;;  %v497_v3 = vpop.f32.mrb[15].mxu0  ;;  %v615_v4 = vmul.f32 %v599_v55, %v503_v21 }
 0x107   : > { %v992_v8 = vpop.eup %991  ;;  %v575_v9 = vmul.f32 %v559_v58, %v1187_v31  ;;  %v545_v10 = vmul.f32 %v529_v60, %v1197_v51  ;;  %v1207_v11 = vadd.f32 %v497_v3, %v353_v57  ;;  %v938_v13 = vpack.c.bf16 %v614_v62, %v612_v40 }
 0x108   : > { %1001 = vtanh.f32 %v574_v0  ;;  %v560_v14 = vadd.f32 0.7978846, %v544_v1  ;;  %v530_v15 = vmul.f32 0.035677407, %v1203_v2  ;;  %v936_v16 = vpack.c.bf16 %v615_v4, %v613_v47 }
 0x109   : > { %1003 = vtanh.f32 %v575_v9  ;;  %v561_v17 = vadd.f32 0.7978846, %v545_v10  ;;  %v531_v18 = vmul.f32 0.035677407, %v1207_v11  ;;  %v505_v19 = vmul.f32 0.5, %v1160_v46 }
 0x10a   : > { %v994_v20 = vpop.eup %993  ;;  %v576_v21 = vmul.f32 %v560_v14, %v1193_v44  ;;  %v546_v22 = vmul.f32 %v530_v15, %v1203_v2  ;;  %937 = vmatprep.subr.bf16.mxu1 %v936_v16  ;;  %v601_v23 = vadd.f32 1.0, %v992_v8  ;;  %v600_v24 = vadd.f32 1.0, %v990_v63 }
 0x10b   : > { %v996_v25 = vpop.eup %995  ;;  %v577_v28 = vmul.f32 %v561_v17, %v1197_v51  ;;  %v547_v29 = vmul.f32 %v531_v18, %v1207_v11  ;;  %939 = vmatpush1.bf16.msra.mxu1 %v938_v13  ;;  %v506_v30 = vmul.f32 0.5, %v1163_v56  ;;  %v602_v32 = vadd.f32 1.0, %v994_v20 }
 0x10c   : > { %1005 = vtanh.f32 %v576_v21  ;;  %v562_v33 = vadd.f32 0.7978846, %v546_v22  ;;  %v507_v46 = vmul.f32 0.5, %v1166_v59  ;;  %v603_v34 = vadd.f32 1.0, %v996_v25 }
 0x10d   : > { %1007 = vtanh.f32 %v577_v28  ;;  %v563_v35 = vadd.f32 0.7978846, %v547_v29  ;;  %v616_v36 = vmul.f32 %v600_v24, %v1183_v27  ;;  %v618_v37 = vmul.f32 %v602_v32, %v506_v30 }
 0x10e   : > { %v998_v38 = vpop.eup %997  ;;  %v578_v39 = vmul.f32 %v562_v33, %v1203_v2  ;;  %v617_v40 = vmul.f32 %v601_v23, %v505_v19  ;;  %v619_v41 = vmul.f32 %v603_v34, %v507_v46  ;;  %v508_v27 = vmul.f32 0.5, %v1171_v5 }
 0x10f   : > { %v1000_v42 = vpop.eup %999  ;;  %v579_v43 = vmul.f32 %v563_v35, %v1207_v11  ;;  %v942_v56 = vpack.c.bf16 %v618_v37, %v616_v36  ;;  %v604_v47 = vadd.f32 1.0, %v998_v38  ;;  %v510_v50 = vmul.f32 0.5, %v1181_v26 }
 0x110   : > { %1009 = vtanh.f32 %v578_v39  ;;  %v940_v45 = vpack.c.bf16 %v619_v41, %v617_v40  ;;  %v605_v48 = vadd.f32 1.0, %v1000_v42  ;;  %v509_v53 = vmul.f32 0.5, %v1175_v12 }
 0x111   : > { %1011 = vtanh.f32 %v579_v43  ;;  %v511_v54 = vmul.f32 0.5, %v1187_v31  ;;  %v620_v57 = vmul.f32 %v604_v47, %v508_v27  ;;  %v512_v26 = vmul.f32 0.5, %v1193_v44  ;;  %v628_v44 = vld [vmem:[%s1252_s3] sm:$0xff] }
 0x112   : > { %v1002_v59 = vpop.eup %1001  ;;  %941 = vmatprep.subr.bf16.mxu1 %v940_v45  ;;  %v621_v61 = vmul.f32 %v605_v48, %v509_v53  ;;  %v514_v12 = vmul.f32 0.5, %v1203_v2  ;;  %v513_v9 = vmul.f32 0.5, %v1197_v51  ;;  %v515_v10 = vmul.f32 0.5, %v1207_v11  ;;  %v729_v2 = vpop.permute.xlu0 %728 }
 0x113   : > { %v1004_v49 = vpop.eup %1003  ;;  %943 = vmatpush1.bf16.msra.mxu1 %v942_v56  ;;  %v606_v52 = vadd.f32 1.0, %v1002_v59 }
 0x114   : > { %v607_v55 = vadd.f32 1.0, %v1004_v49 }
 0x115   : > { %v622_v58 = vmul.f32 %v606_v52, %v510_v50 }
 0x116   : > { %v1006_v60 = vpop.eup %1005  ;;  %v623_v62 = vmul.f32 %v607_v55, %v511_v54 }
 0x117   : > { %v1008_v63 = vpop.eup %1007  ;;  %v946_v0 = vpack.c.bf16 %v622_v58, %v620_v57  ;;  %v608_v3 = vadd.f32 1.0, %v1006_v60 }
 0x118   : > { %v944_v1 = vpack.c.bf16 %v623_v62, %v621_v61  ;;  %v609_v5 = vadd.f32 1.0, %v1008_v63 }
 0x119   : > { %v624_v14 = vmul.f32 %v608_v3, %v512_v26 }
 0x11a   : > { %v1010_v4 = vpop.eup %1009  ;;  %945 = vmatprep.subr.bf16.mxu1 %v944_v1  ;;  %v625_v16 = vmul.f32 %v609_v5, %v513_v9 }
 0x11b   : > { %v1012_v8 = vpop.eup %1011  ;;  %947 = vmatpush1.bf16.msra.mxu1 %v946_v0  ;;  %v610_v31 = vadd.f32 1.0, %v1010_v4 }
 0x11c   : > { %v611_v13 = vadd.f32 1.0, %v1012_v8 }
 0x11d   : > { %v626_v15 = vmul.f32 %v610_v31, %v514_v12 }
 0x11e   : > { %v627_v17 = vmul.f32 %v611_v13, %v515_v10 }
 0x11f   : > { %v950_v18 = vpack.c.bf16 %v626_v15, %v624_v14 }
 0x120   : > { %v948_v19 = vpack.c.bf16 %v627_v17, %v625_v16 }
 0x122   : > { %949 = vmatprep.subr.bf16.mxu1 %v948_v19 }
 0x123   : > { %951 = vmatpush1.bf16.msra.mxu1 %v950_v18 }
 0x124   : > { %734 = vmatprep.subr.mxu1 %v1109_v7 }
 0x126   : > { %933 = vmatmul.mubr.msk.f32.vlgmr.msra.gmra.mrb[0].mxu1 %vm629_vm2, %v628_v44 }
 0x12c   : > { %735 = vmatpush1.xpose.msra.mxu1 %v1105_v6 }
 0x1f9   : > { %v699_v51 = vpop.f32.mrb[0].mxu1 }
 0x1fa   : > { %v701_v11 = vpop.f32.mrb[1].mxu1  ;;  %v731_v21 = vadd.f32 %v729_v2, %v699_v51 }
 0x1fb   : > { %v732_v20 = vadd.f32 %v729_v2, %v701_v11 }
 0x1fd   : > { %798 = vmatprep.mubr.f32.mxu1 %v732_v20 }
 0x1fe   : > { %799 = vmatmul.mubr.f32.vlgmr.msra.gmra.mrb[2].mxu1 %v731_v21 }
 0x2d1   : > { %v800_v22 = vpop.f32.mrb[2].mxu1 }
 0x2d2   : > { %804 = vst.msk [vmem:[%s297_s24] sm:$0xff] %vm357_vm1, %v800_v22  ;;  %v802_v7 = vpop.f32.mrb[3].mxu1 }
 0x2d3 PF: > { %s15_s20 = sadd.s32 1, %s1035_s20   ;;  %s1255_s18 = smov %s1031_s19 }
 0x2d4   : > { %p12_p6 = scmp.ge.s32.totalorder %s15_s20, 4   ;;  %s1256_s19 = smov %s1258_s21 }
 0x2d6   :  { %14 = sbr.rel (!%p12_p6) target bundleno = 2 (0x2), region = 91 }

</bundles_post_ra>
